<compile_context>
chip_gen: v6e
topology: v6e:2x2x1
jax: 0.10.0
libtpu: 0.0.40
codegen_flags: <defaults>
</compile_context>

<pallas_src>
import functools

import jax
import jax.numpy as jnp
from jax.experimental import pallas as pl
from jax.experimental.pallas import tpu as pltpu

DIM = 48                         # must be divisible by num_heads=3
NUM_HEADS = 3
HEAD_DIM = DIM // NUM_HEADS      # 16
MLP_RATIO = 4
HIDDEN = DIM * MLP_RATIO         # 192
LN_EPS = 1e-5                    # PyTorch nn.LayerNorm default
ATTN_SCALE = HEAD_DIM ** -0.5

# Packed weight-matrix column offsets. Each segment starts at a 128-lane boundary so
# every in-kernel lane slice is vreg-aligned.
Q_OFF = 0                        # Wq * scale : cols [0, 48)
KV_OFF = 128                     # [Wk | Wv]  : cols [128, 224)
O_OFF = 256                      # Wo         : cols [256, 304)
W1_OFF = 384                     # W1         : cols [384, 576)
WPACK_COLS = 640

# Packed bias / LayerNorm rows in an (8, HIDDEN) buffer.
ROW_BQ, ROW_BKV, ROW_BO, ROW_B1, ROW_B2, ROW_LN_G, ROW_LN_B = 0, 1, 2, 3, 4, 5, 6


def _layernorm(x, gamma, beta):
    # PyTorch LayerNorm: biased variance over the last dim, f32 statistics.
    mean = jnp.mean(x, axis=-1, keepdims=True)
    var = jnp.mean((x - mean) ** 2, axis=-1, keepdims=True)
    return (x - mean) * jax.lax.rsqrt(var + LN_EPS) * gamma + beta


def _gelu_exact(x):
    # nn.GELU() default is the exact erf formulation.
    return 0.5 * x * (1.0 + jax.lax.erf(x * 0.7071067811865476))


def caformer_kernel(qx_ref, kv_ref, w_ref, w2_ref, b_ref, out_ref, *,
                    Bb, Nq, Nkv, compute_dtype):
    f32 = jnp.float32
    cdt = compute_dtype

    qx = qx_ref[...]                                   # (Bb*Nq,  D)  f32
    kvx = kv_ref[...]                                  # (Bb*Nkv, D)  f32

    # ---- packed biases / LayerNorm params (always f32) ----
    bq = b_ref[ROW_BQ:ROW_BQ + 1, 0:DIM]               # (1, D)   (scale pre-folded)
    bkv = b_ref[ROW_BKV:ROW_BKV + 1, 0:2 * DIM]        # (1, 2D)  [bk | bv]
    bo = b_ref[ROW_BO:ROW_BO + 1, 0:DIM]
    b1 = b_ref[ROW_B1:ROW_B1 + 1, :]                   # (1, HIDDEN)
    b2 = b_ref[ROW_B2:ROW_B2 + 1, 0:DIM]
    gamma = b_ref[ROW_LN_G:ROW_LN_G + 1, 0:DIM]
    beta = b_ref[ROW_LN_B:ROW_LN_B + 1, 0:DIM]

    # ---- projections (scale folded into Wq/bq; K and V fused into one matmul) ----
    q = jnp.dot(qx.astype(cdt), w_ref[:, Q_OFF:Q_OFF + DIM],
                preferred_element_type=f32) + bq                    # (Bb*Nq, D)
    kvp = jnp.dot(kvx.astype(cdt), w_ref[:, KV_OFF:KV_OFF + 2 * DIM],
                  preferred_element_type=f32) + bkv                 # (Bb*Nkv, 2D)
    k = kvp[:, 0:DIM]
    v = kvp[:, DIM:2 * DIM]

    # ---- attention: heads statically unrolled, batched over Bb; the per-head output
    #      is folded straight into the output projection (no concatenate) ----
    attn = None
    for h in range(NUM_HEADS):
        sl = slice(h * HEAD_DIM, (h + 1) * HEAD_DIM)
        qh = q[:, sl].reshape(Bb, Nq, HEAD_DIM).astype(cdt)
        kh = k[:, sl].reshape(Bb, Nkv, HEAD_DIM).astype(cdt)
        vh = v[:, sl].reshape(Bb, Nkv, HEAD_DIM).astype(cdt)

        s = jnp.einsum('bqc,bkc->bqk', qh, kh,
                       preferred_element_type=f32)                  # (Bb, Nq, Nkv)
        s = s - jnp.max(s, axis=-1, keepdims=True)
        p = jnp.exp(s)
        p = p * pl.reciprocal(jnp.sum(p, axis=-1, keepdims=True), approx=True)
        oh = jnp.einsum('bqk,bkc->bqc', p.astype(cdt), vh,
                        preferred_element_type=f32)                 # (Bb, Nq, hd)

        contrib = jnp.dot(oh.reshape(Bb * Nq, HEAD_DIM).astype(cdt),
                          w_ref[h * HEAD_DIM:(h + 1) * HEAD_DIM, O_OFF:O_OFF + DIM],
                          preferred_element_type=f32)               # (Bb*Nq, D)
        attn = contrib if attn is None else attn + contrib
    attn = attn + bo

    # ---- residual branch 1 (shared LayerNorm) ----
    x = _layernorm(attn, gamma, beta) + qx

    # ---- MLP ----
    h1 = jnp.dot(x.astype(cdt), w_ref[:, W1_OFF:W1_OFF + HIDDEN],
                 preferred_element_type=f32) + b1
    h1 = _gelu_exact(h1)
    y = jnp.dot(h1.astype(cdt), w2_ref[...], preferred_element_type=f32) + b2
    # TODO(synk): dropout (drop=0.0 in the reference default) is identity and omitted.

    # ---- residual branch 2 (same shared LayerNorm params) ----
    out_ref[...] = (_layernorm(y, gamma, beta) + x).astype(out_ref.dtype)


def pack_params(p, use_bf16):
    """Pack 14 small tensors into 3 buffers (weight pack, W2, bias/LN pack)."""
    wdt = jnp.bfloat16 if use_bf16 else jnp.float32
    w_pack = jnp.zeros((DIM, WPACK_COLS), jnp.float32)
    w_pack = w_pack.at[:, Q_OFF:Q_OFF + DIM].set(p["wq"] * ATTN_SCALE)
    w_pack = w_pack.at[:, KV_OFF:KV_OFF + DIM].set(p["wk"])
    w_pack = w_pack.at[:, KV_OFF + DIM:KV_OFF + 2 * DIM].set(p["wv"])
    w_pack = w_pack.at[:, O_OFF:O_OFF + DIM].set(p["wo"])
    w_pack = w_pack.at[:, W1_OFF:W1_OFF + HIDDEN].set(p["w1"])
    w_pack = w_pack.astype(wdt)
    w2 = p["w2"].astype(wdt)

    b_pack = jnp.zeros((8, HIDDEN), jnp.float32)
    b_pack = b_pack.at[ROW_BQ, 0:DIM].set(p["bq"] * ATTN_SCALE)
    b_pack = b_pack.at[ROW_BKV, 0:DIM].set(p["bk"])
    b_pack = b_pack.at[ROW_BKV, DIM:2 * DIM].set(p["bv"])
    b_pack = b_pack.at[ROW_BO, 0:DIM].set(p["bo"])
    b_pack = b_pack.at[ROW_B1, 0:HIDDEN].set(p["b1"])
    b_pack = b_pack.at[ROW_B2, 0:DIM].set(p["b2"])
    b_pack = b_pack.at[ROW_LN_G, 0:DIM].set(p["ln_g"])
    b_pack = b_pack.at[ROW_LN_B, 0:DIM].set(p["ln_b"])
    return w_pack, w2, b_pack


def _pick_block_batch(B, requested, cap=64):
    # cap=64 keeps per-step VMEM well under 2 MiB (tokens + 192-wide MLP activations)
    # while making the flattened MXU M-dim large enough to amortise the weight pack
    # and the ~0.35 us/grid-step overhead.
    if requested is not None:
        assert B % requested == 0, "block_batch must divide the batch"
        return requested
    bb = min(B, cap)
    while B % bb:
        bb -= 1
    return bb


def caformer_forward(q_x, kv_x, params, *, block_batch=None, use_bf16=False):
    B, Nq, D = q_x.shape
    Bk, Nkv, Dk = kv_x.shape
    assert D == DIM and Dk == DIM and Bk == B

    Bb = _pick_block_batch(B, block_batch)
    Mq, Mk = Bb * Nq, Bb * Nkv
    assert (Mq % 8 == 0 or Bb == B) and (Mk % 8 == 0 or Bb == B)

    w_pack, w2, b_pack = pack_params(params, use_bf16)

    # Present token sequences as 2-D (B*N, D) slabs (free reshapes outside the kernel).
    qx2 = q_x.reshape(B * Nq, D)
    kv2 = kv_x.reshape(B * Nkv, D)

    kernel = functools.partial(
        caformer_kernel, Bb=Bb, Nq=Nq, Nkv=Nkv,
        compute_dtype=jnp.bfloat16 if use_bf16 else jnp.float32)

    out2 = pl.pallas_call(
        kernel,
        out_shape=jax.ShapeDtypeStruct((B * Nq, D), jnp.float32),
        grid_spec=pltpu.PrefetchScalarGridSpec(
            num_scalar_prefetch=0,
            grid=(B // Bb,),
            in_specs=[
                pl.BlockSpec((Mq, D), lambda i: (i, 0)),            # q_x tokens
                pl.BlockSpec((Mk, D), lambda i: (i, 0)),            # kv_x tokens
                pl.BlockSpec((DIM, WPACK_COLS), lambda i: (0, 0)),  # packed weights
                pl.BlockSpec((HIDDEN, DIM), lambda i: (0, 0)),      # W2
                pl.BlockSpec((8, HIDDEN), lambda i: (0, 0)),        # packed biases / LN
            ],
            out_specs=pl.BlockSpec((Mq, D), lambda i: (i, 0)),
        ),
        compiler_params=pltpu.CompilerParams(
            dimension_semantics=("parallel",)),
    )(qx2, kv2, w_pack, w2, b_pack)
    return out2.reshape(B, Nq, D)


def caformer_reference(q_x, kv_x, p):
    """Pure-JAX reference with exact softmax division (mirrors the PyTorch forward)."""
    def ln(x):
        return _layernorm(x, p["ln_g"], p["ln_b"])

    q = jnp.einsum('bnd,de->bne', q_x, p["wq"]) + p["bq"]
    k = jnp.einsum('bnd,de->bne', kv_x, p["wk"]) + p["bk"]
    v = jnp.einsum('bnd,de->bne', kv_x, p["wv"]) + p["bv"]
    outs = []
    for h in range(NUM_HEADS):
        sl = slice(h * HEAD_DIM, (h + 1) * HEAD_DIM)
        s = jnp.einsum('bqc,bkc->bqk', q[..., sl], k[..., sl]) * ATTN_SCALE
        pm = jax.nn.softmax(s, axis=-1)
        outs.append(jnp.einsum('bqk,bkc->bqc', pm, v[..., sl]))
    attn = jnp.concatenate(outs, axis=-1)
    attn = jnp.einsum('bnd,de->bne', attn, p["wo"]) + p["bo"]
    x = ln(attn) + q_x
    h1 = _gelu_exact(jnp.einsum('bnd,dh->bnh', x, p["w1"]) + p["b1"])
    y = jnp.einsum('bnh,hd->bnd', h1, p["w2"]) + p["b2"]
    return ln(y) + x


def init_params(key):
    ks = jax.random.split(key, 12)
    s = 0.1
    return {
        "wq": s * jax.random.normal(ks[0], (DIM, DIM), jnp.float32),
        "bq": s * jax.random.normal(ks[1], (DIM,), jnp.float32),
        "wk": s * jax.random.normal(ks[2], (DIM, DIM), jnp.float32),
        "bk": s * jax.random.normal(ks[3], (DIM,), jnp.float32),
        "wv": s * jax.random.normal(ks[4], (DIM, DIM), jnp.float32),
        "bv": s * jax.random.normal(ks[5], (DIM,), jnp.float32),
        "wo": s * jax.random.normal(ks[6], (DIM, DIM), jnp.float32),
        "bo": s * jax.random.normal(ks[7], (DIM,), jnp.float32),
        "ln_g": 1.0 + 0.1 * jax.random.normal(ks[8], (DIM,), jnp.float32),
        "ln_b": 0.1 * jax.random.normal(ks[9], (DIM,), jnp.float32),
        "w1": s * jax.random.normal(ks[10], (DIM, HIDDEN), jnp.float32),
        "b1": s * jax.random.normal(ks[11], (HIDDEN,), jnp.float32),
        "w2": s * jax.random.normal(ks[0], (HIDDEN, DIM), jnp.float32),
        "b2": s * jax.random.normal(ks[1], (DIM,), jnp.float32),
    }


if __name__ == "__main__":
    key = jax.random.PRNGKey(0)
    kp, kq, kkv = jax.random.split(key, 3)

    B, Nq, Nkv = 2, 8, 16
    q_x = jax.random.normal(kq, (B, Nq, DIM), jnp.float32)
    kv_x = jax.random.normal(kkv, (B, Nkv, DIM), jnp.float32)
    params = init_params(kp)

    ref = jax.block_until_ready(caformer_reference(q_x, kv_x, params))

    # f32 matmul path (default): matches the reference up to approx-reciprocal softmax.
    out = jax.block_until_ready(caformer_forward(q_x, kv_x, params))
    assert out.shape == (B, Nq, DIM)
    err = float(jnp.max(jnp.abs(out - ref)))
    assert err < 5e-2, f"f32 kernel mismatch vs reference: max abs err {err}"

    # bf16 MXU-operand path (v6e/v7x optimization); looser tolerance.
    out_bf16 = jax.block_until_ready(
        caformer_forward(q_x, kv_x, params, use_bf16=True))
    err_bf = float(jnp.max(jnp.abs(out_bf16 - ref)))
    assert err_bf < 2e-1, f"bf16 kernel mismatch vs reference: max abs err {err_bf}"

    print("KERNEL_OK")
</pallas_src>

<mosaic_0001>
module attributes {stable_mosaic.version = 11 : i64} {
  func.func @caformer_kernel(%arg0: i32, %arg1: memref<16x48xf32, #tpu.memory_space<vmem>>, %arg2: memref<32x48xf32, #tpu.memory_space<vmem>>, %arg3: memref<48x640xf32, #tpu.memory_space<vmem>>, %arg4: memref<192x48xf32, #tpu.memory_space<vmem>>, %arg5: memref<8x192xf32, #tpu.memory_space<vmem>>, %arg6: memref<16x48xf32, #tpu.memory_space<vmem>>) attributes {dimension_semantics = [#tpu.dimension_semantics<parallel>], iteration_bounds = array<i64: 1>, scalar_prefetch = 0 : i64, scratch_operands = 0 : i64, tpu.core_type = #tpu.core_type<tc>, window_params = [{transform_indices = @transform_0, window_bounds = array<i64: 16, 48>}, {transform_indices = @transform_1, window_bounds = array<i64: 32, 48>}, {pipeline_mode = #tpu.pipeline_mode<synchronous>, transform_indices = @transform_2, window_bounds = array<i64: 48, 640>}, {pipeline_mode = #tpu.pipeline_mode<synchronous>, transform_indices = @transform_3, window_bounds = array<i64: 192, 48>}, {pipeline_mode = #tpu.pipeline_mode<synchronous>, transform_indices = @transform_4, window_bounds = array<i64: 8, 192>}, {transform_indices = @transform_5, window_bounds = array<i64: 16, 48>}]} {
    %c0 = arith.constant 0 : index
    %c0_0 = arith.constant 0 : index
    %0 = vector.load %arg1[%c0, %c0_0] : memref<16x48xf32, #tpu.memory_space<vmem>>, vector<16x48xf32>
    %c0_1 = arith.constant 0 : index
    %c0_2 = arith.constant 0 : index
    %1 = vector.load %arg2[%c0_1, %c0_2] : memref<32x48xf32, #tpu.memory_space<vmem>>, vector<32x48xf32>
    %c0_3 = arith.constant 0 : index
    %c0_4 = arith.constant 0 : index
    %2 = vector.load %arg5[%c0_3, %c0_4] : memref<8x192xf32, #tpu.memory_space<vmem>>, vector<1x48xf32>
    %c1 = arith.constant 1 : index
    %c0_5 = arith.constant 0 : index
    %3 = vector.load %arg5[%c1, %c0_5] : memref<8x192xf32, #tpu.memory_space<vmem>>, vector<1x96xf32>
    %c2 = arith.constant 2 : index
    %c0_6 = arith.constant 0 : index
    %4 = vector.load %arg5[%c2, %c0_6] : memref<8x192xf32, #tpu.memory_space<vmem>>, vector<1x48xf32>
    %c3 = arith.constant 3 : index
    %c0_7 = arith.constant 0 : index
    %5 = vector.load %arg5[%c3, %c0_7] : memref<8x192xf32, #tpu.memory_space<vmem>>, vector<1x192xf32>
    %c4 = arith.constant 4 : index
    %c0_8 = arith.constant 0 : index
    %6 = vector.load %arg5[%c4, %c0_8] : memref<8x192xf32, #tpu.memory_space<vmem>>, vector<1x48xf32>
    %c5 = arith.constant 5 : index
    %c0_9 = arith.constant 0 : index
    %7 = vector.load %arg5[%c5, %c0_9] : memref<8x192xf32, #tpu.memory_space<vmem>>, vector<1x48xf32>
    %c6 = arith.constant 6 : index
    %c0_10 = arith.constant 0 : index
    %8 = vector.load %arg5[%c6, %c0_10] : memref<8x192xf32, #tpu.memory_space<vmem>>, vector<1x48xf32>
    %c0_11 = arith.constant 0 : index
    %c0_12 = arith.constant 0 : index
    %9 = vector.load %arg3[%c0_11, %c0_12] : memref<48x640xf32, #tpu.memory_space<vmem>>, vector<48x48xf32>
    %cst = arith.constant dense<0.000000e+00> : vector<16x48xf32>
    %10 = tpu.matmul %0, %9, %cst {dimension_numbers = #tpu.dot_dimension_numbers<[1], [0], [0], [1], [0, 0, 1, 1], [], []>} : vector<16x48xf32>, vector<48x48xf32>, vector<16x48xf32> -> vector<16x48xf32>
    %11 = vector.broadcast %2 : vector<1x48xf32> to vector<16x48xf32>
    %12 = arith.addf %10, %11 : vector<16x48xf32>
    %c0_13 = arith.constant 0 : index
    %c128 = arith.constant 128 : index
    %13 = vector.load %arg3[%c0_13, %c128] : memref<48x640xf32, #tpu.memory_space<vmem>>, vector<48x96xf32>
    %cst_14 = arith.constant dense<0.000000e+00> : vector<32x96xf32>
    %14 = tpu.matmul %1, %13, %cst_14 {dimension_numbers = #tpu.dot_dimension_numbers<[1], [0], [0], [1], [0, 0, 1, 1], [], []>} : vector<32x48xf32>, vector<48x96xf32>, vector<32x96xf32> -> vector<32x96xf32>
    %15 = vector.broadcast %3 : vector<1x96xf32> to vector<32x96xf32>
    %16 = arith.addf %14, %15 : vector<32x96xf32>
    %17 = vector.extract_strided_slice %16 {offsets = [0, 0], sizes = [32, 48], strides = [1, 1]} : vector<32x96xf32> to vector<32x48xf32>
    %18 = vector.extract_strided_slice %16 {offsets = [0, 48], sizes = [32, 48], strides = [1, 1]} : vector<32x96xf32> to vector<32x48xf32>
    %19 = vector.extract_strided_slice %12 {offsets = [0, 0], sizes = [16, 16], strides = [1, 1]} : vector<16x48xf32> to vector<16x16xf32>
    %20 = vector.shape_cast %19 : vector<16x16xf32> to vector<2x8x16xf32>
    %21 = vector.extract_strided_slice %17 {offsets = [0, 0], sizes = [32, 16], strides = [1, 1]} : vector<32x48xf32> to vector<32x16xf32>
    %22 = vector.shape_cast %21 : vector<32x16xf32> to vector<2x16x16xf32>
    %23 = vector.extract_strided_slice %18 {offsets = [0, 0], sizes = [32, 16], strides = [1, 1]} : vector<32x48xf32> to vector<32x16xf32>
    %24 = vector.shape_cast %23 : vector<32x16xf32> to vector<2x16x16xf32>
    "tpu.trace_start"() <{level = 10 : i32, message = "bqc,bkc->bqk"}> : () -> ()
    %cst_15 = arith.constant dense<0.000000e+00> : vector<2x8x16xf32>
    %25 = tpu.matmul %20, %22, %cst_15 {dimension_numbers = #tpu.dot_dimension_numbers<[2], [2], [1], [1], [0, 0, 0, 1, 1, 1], [0], [0]>} : vector<2x8x16xf32>, vector<2x16x16xf32>, vector<2x8x16xf32> -> vector<2x8x16xf32>
    "tpu.trace_stop"() : () -> ()
    %cst_16 = arith.constant dense<0xFF800000> : vector<2x8xf32>
    %26 = vector.multi_reduction <maximumf>, %25, %cst_16 [2] : vector<2x8x16xf32> to vector<2x8xf32>
    %27 = vector.shape_cast %26 : vector<2x8xf32> to vector<2x8x1xf32>
    %28 = vector.broadcast %27 : vector<2x8x1xf32> to vector<2x8x16xf32>
    %29 = arith.subf %25, %28 : vector<2x8x16xf32>
    %30 = math.exp %29 : vector<2x8x16xf32>
    %cst_17 = arith.constant dense<0.000000e+00> : vector<2x8xf32>
    %31 = vector.multi_reduction <add>, %30, %cst_17 [2] : vector<2x8x16xf32> to vector<2x8xf32>
    %32 = vector.shape_cast %31 : vector<2x8xf32> to vector<2x8x1xf32>
    %33 = tpu.reciprocal %32 {approx = true} : vector<2x8x1xf32> -> vector<2x8x1xf32>
    %34 = vector.broadcast %33 : vector<2x8x1xf32> to vector<2x8x16xf32>
    %35 = arith.mulf %30, %34 : vector<2x8x16xf32>
    "tpu.trace_start"() <{level = 10 : i32, message = "bqk,bkc->bqc"}> : () -> ()
    %cst_18 = arith.constant dense<0.000000e+00> : vector<2x8x16xf32>
    %36 = tpu.matmul %35, %24, %cst_18 {dimension_numbers = #tpu.dot_dimension_numbers<[2], [1], [1], [2], [0, 0, 0, 1, 1, 2], [0], [0]>} : vector<2x8x16xf32>, vector<2x16x16xf32>, vector<2x8x16xf32> -> vector<2x8x16xf32>
    "tpu.trace_stop"() : () -> ()
    %37 = vector.shape_cast %36 : vector<2x8x16xf32> to vector<16x16xf32>
    %c0_19 = arith.constant 0 : index
    %c256 = arith.constant 256 : index
    %38 = vector.load %arg3[%c0_19, %c256] : memref<48x640xf32, #tpu.memory_space<vmem>>, vector<16x48xf32>
    %cst_20 = arith.constant dense<0.000000e+00> : vector<16x48xf32>
    %39 = tpu.matmul %37, %38, %cst_20 {dimension_numbers = #tpu.dot_dimension_numbers<[1], [0], [0], [1], [0, 0, 1, 1], [], []>} : vector<16x16xf32>, vector<16x48xf32>, vector<16x48xf32> -> vector<16x48xf32>
    %40 = vector.extract_strided_slice %12 {offsets = [0, 16], sizes = [16, 16], strides = [1, 1]} : vector<16x48xf32> to vector<16x16xf32>
    %41 = vector.shape_cast %40 : vector<16x16xf32> to vector<2x8x16xf32>
    %42 = vector.extract_strided_slice %17 {offsets = [0, 16], sizes = [32, 16], strides = [1, 1]} : vector<32x48xf32> to vector<32x16xf32>
    %43 = vector.shape_cast %42 : vector<32x16xf32> to vector<2x16x16xf32>
    %44 = vector.extract_strided_slice %18 {offsets = [0, 16], sizes = [32, 16], strides = [1, 1]} : vector<32x48xf32> to vector<32x16xf32>
    %45 = vector.shape_cast %44 : vector<32x16xf32> to vector<2x16x16xf32>
    "tpu.trace_start"() <{level = 10 : i32, message = "bqc,bkc->bqk"}> : () -> ()
    %cst_21 = arith.constant dense<0.000000e+00> : vector<2x8x16xf32>
    %46 = tpu.matmul %41, %43, %cst_21 {dimension_numbers = #tpu.dot_dimension_numbers<[2], [2], [1], [1], [0, 0, 0, 1, 1, 1], [0], [0]>} : vector<2x8x16xf32>, vector<2x16x16xf32>, vector<2x8x16xf32> -> vector<2x8x16xf32>
    "tpu.trace_stop"() : () -> ()
    %cst_22 = arith.constant dense<0xFF800000> : vector<2x8xf32>
    %47 = vector.multi_reduction <maximumf>, %46, %cst_22 [2] : vector<2x8x16xf32> to vector<2x8xf32>
    %48 = vector.shape_cast %47 : vector<2x8xf32> to vector<2x8x1xf32>
    %49 = vector.broadcast %48 : vector<2x8x1xf32> to vector<2x8x16xf32>
    %50 = arith.subf %46, %49 : vector<2x8x16xf32>
    %51 = math.exp %50 : vector<2x8x16xf32>
    %cst_23 = arith.constant dense<0.000000e+00> : vector<2x8xf32>
    %52 = vector.multi_reduction <add>, %51, %cst_23 [2] : vector<2x8x16xf32> to vector<2x8xf32>
    %53 = vector.shape_cast %52 : vector<2x8xf32> to vector<2x8x1xf32>
    %54 = tpu.reciprocal %53 {approx = true} : vector<2x8x1xf32> -> vector<2x8x1xf32>
    %55 = vector.broadcast %54 : vector<2x8x1xf32> to vector<2x8x16xf32>
    %56 = arith.mulf %51, %55 : vector<2x8x16xf32>
    "tpu.trace_start"() <{level = 10 : i32, message = "bqk,bkc->bqc"}> : () -> ()
    %cst_24 = arith.constant dense<0.000000e+00> : vector<2x8x16xf32>
    %57 = tpu.matmul %56, %45, %cst_24 {dimension_numbers = #tpu.dot_dimension_numbers<[2], [1], [1], [2], [0, 0, 0, 1, 1, 2], [0], [0]>} : vector<2x8x16xf32>, vector<2x16x16xf32>, vector<2x8x16xf32> -> vector<2x8x16xf32>
    "tpu.trace_stop"() : () -> ()
    %58 = vector.shape_cast %57 : vector<2x8x16xf32> to vector<16x16xf32>
    %c16 = arith.constant 16 : index
    %c256_25 = arith.constant 256 : index
    %59 = vector.load %arg3[%c16, %c256_25] : memref<48x640xf32, #tpu.memory_space<vmem>>, vector<16x48xf32>
    %cst_26 = arith.constant dense<0.000000e+00> : vector<16x48xf32>
    %60 = tpu.matmul %58, %59, %cst_26 {dimension_numbers = #tpu.dot_dimension_numbers<[1], [0], [0], [1], [0, 0, 1, 1], [], []>} : vector<16x16xf32>, vector<16x48xf32>, vector<16x48xf32> -> vector<16x48xf32>
    %61 = arith.addf %39, %60 : vector<16x48xf32>
    %62 = vector.extract_strided_slice %12 {offsets = [0, 32], sizes = [16, 16], strides = [1, 1]} : vector<16x48xf32> to vector<16x16xf32>
    %63 = vector.shape_cast %62 : vector<16x16xf32> to vector<2x8x16xf32>
    %64 = vector.extract_strided_slice %17 {offsets = [0, 32], sizes = [32, 16], strides = [1, 1]} : vector<32x48xf32> to vector<32x16xf32>
    %65 = vector.shape_cast %64 : vector<32x16xf32> to vector<2x16x16xf32>
    %66 = vector.extract_strided_slice %18 {offsets = [0, 32], sizes = [32, 16], strides = [1, 1]} : vector<32x48xf32> to vector<32x16xf32>
    %67 = vector.shape_cast %66 : vector<32x16xf32> to vector<2x16x16xf32>
    "tpu.trace_start"() <{level = 10 : i32, message = "bqc,bkc->bqk"}> : () -> ()
    %cst_27 = arith.constant dense<0.000000e+00> : vector<2x8x16xf32>
    %68 = tpu.matmul %63, %65, %cst_27 {dimension_numbers = #tpu.dot_dimension_numbers<[2], [2], [1], [1], [0, 0, 0, 1, 1, 1], [0], [0]>} : vector<2x8x16xf32>, vector<2x16x16xf32>, vector<2x8x16xf32> -> vector<2x8x16xf32>
    "tpu.trace_stop"() : () -> ()
    %cst_28 = arith.constant dense<0xFF800000> : vector<2x8xf32>
    %69 = vector.multi_reduction <maximumf>, %68, %cst_28 [2] : vector<2x8x16xf32> to vector<2x8xf32>
    %70 = vector.shape_cast %69 : vector<2x8xf32> to vector<2x8x1xf32>
    %71 = vector.broadcast %70 : vector<2x8x1xf32> to vector<2x8x16xf32>
    %72 = arith.subf %68, %71 : vector<2x8x16xf32>
    %73 = math.exp %72 : vector<2x8x16xf32>
    %cst_29 = arith.constant dense<0.000000e+00> : vector<2x8xf32>
    %74 = vector.multi_reduction <add>, %73, %cst_29 [2] : vector<2x8x16xf32> to vector<2x8xf32>
    %75 = vector.shape_cast %74 : vector<2x8xf32> to vector<2x8x1xf32>
    %76 = tpu.reciprocal %75 {approx = true} : vector<2x8x1xf32> -> vector<2x8x1xf32>
    %77 = vector.broadcast %76 : vector<2x8x1xf32> to vector<2x8x16xf32>
    %78 = arith.mulf %73, %77 : vector<2x8x16xf32>
    "tpu.trace_start"() <{level = 10 : i32, message = "bqk,bkc->bqc"}> : () -> ()
    %cst_30 = arith.constant dense<0.000000e+00> : vector<2x8x16xf32>
    %79 = tpu.matmul %78, %67, %cst_30 {dimension_numbers = #tpu.dot_dimension_numbers<[2], [1], [1], [2], [0, 0, 0, 1, 1, 2], [0], [0]>} : vector<2x8x16xf32>, vector<2x16x16xf32>, vector<2x8x16xf32> -> vector<2x8x16xf32>
    "tpu.trace_stop"() : () -> ()
    %80 = vector.shape_cast %79 : vector<2x8x16xf32> to vector<16x16xf32>
    %c32 = arith.constant 32 : index
    %c256_31 = arith.constant 256 : index
    %81 = vector.load %arg3[%c32, %c256_31] : memref<48x640xf32, #tpu.memory_space<vmem>>, vector<16x48xf32>
    %cst_32 = arith.constant dense<0.000000e+00> : vector<16x48xf32>
    %82 = tpu.matmul %80, %81, %cst_32 {dimension_numbers = #tpu.dot_dimension_numbers<[1], [0], [0], [1], [0, 0, 1, 1], [], []>} : vector<16x16xf32>, vector<16x48xf32>, vector<16x48xf32> -> vector<16x48xf32>
    %83 = arith.addf %61, %82 : vector<16x48xf32>
    %84 = vector.broadcast %4 : vector<1x48xf32> to vector<16x48xf32>
    %85 = arith.addf %83, %84 : vector<16x48xf32>
    %cst_33 = arith.constant dense<0.000000e+00> : vector<16xf32>
    %86 = vector.multi_reduction <add>, %85, %cst_33 [1] : vector<16x48xf32> to vector<16xf32>
    %87 = vector.shape_cast %86 : vector<16xf32> to vector<16x1xf32>
    %cst_34 = arith.constant 4.800000e+01 : f32
    %88 = vector.broadcast %cst_34 : f32 to vector<16x1xf32>
    %89 = arith.divf %87, %88 : vector<16x1xf32>
    %90 = vector.broadcast %89 : vector<16x1xf32> to vector<16x48xf32>
    %91 = arith.subf %85, %90 : vector<16x48xf32>
    %92 = arith.mulf %91, %91 : vector<16x48xf32>
    %cst_35 = arith.constant dense<0.000000e+00> : vector<16xf32>
    %93 = vector.multi_reduction <add>, %92, %cst_35 [1] : vector<16x48xf32> to vector<16xf32>
    %94 = vector.shape_cast %93 : vector<16xf32> to vector<16x1xf32>
    %cst_36 = arith.constant 4.800000e+01 : f32
    %95 = vector.broadcast %cst_36 : f32 to vector<16x1xf32>
    %96 = arith.divf %94, %95 : vector<16x1xf32>
    %97 = vector.broadcast %89 : vector<16x1xf32> to vector<16x48xf32>
    %98 = arith.subf %85, %97 : vector<16x48xf32>
    %cst_37 = arith.constant 9.99999974E-6 : f32
    %99 = vector.broadcast %cst_37 : f32 to vector<16x1xf32>
    %100 = arith.addf %96, %99 : vector<16x1xf32>
    %101 = math.rsqrt %100 : vector<16x1xf32>
    %102 = vector.broadcast %101 : vector<16x1xf32> to vector<16x48xf32>
    %103 = arith.mulf %98, %102 : vector<16x48xf32>
    %104 = vector.broadcast %7 : vector<1x48xf32> to vector<16x48xf32>
    %105 = arith.mulf %103, %104 : vector<16x48xf32>
    %106 = vector.broadcast %8 : vector<1x48xf32> to vector<16x48xf32>
    %107 = arith.addf %105, %106 : vector<16x48xf32>
    %108 = arith.addf %107, %0 : vector<16x48xf32>
    %c0_38 = arith.constant 0 : index
    %c384 = arith.constant 384 : index
    %109 = vector.load %arg3[%c0_38, %c384] : memref<48x640xf32, #tpu.memory_space<vmem>>, vector<48x192xf32>
    %cst_39 = arith.constant dense<0.000000e+00> : vector<16x192xf32>
    %110 = tpu.matmul %108, %109, %cst_39 {dimension_numbers = #tpu.dot_dimension_numbers<[1], [0], [0], [1], [0, 0, 1, 1], [], []>} : vector<16x48xf32>, vector<48x192xf32>, vector<16x192xf32> -> vector<16x192xf32>
    %111 = vector.broadcast %5 : vector<1x192xf32> to vector<16x192xf32>
    %112 = arith.addf %110, %111 : vector<16x192xf32>
    %cst_40 = arith.constant 5.000000e-01 : f32
    %113 = vector.broadcast %cst_40 : f32 to vector<16x192xf32>
    %114 = arith.mulf %113, %112 : vector<16x192xf32>
    %cst_41 = arith.constant 0.707106769 : f32
    %115 = vector.broadcast %cst_41 : f32 to vector<16x192xf32>
    %116 = arith.mulf %112, %115 : vector<16x192xf32>
    %117 = math.erf %116 : vector<16x192xf32>
    %cst_42 = arith.constant 1.000000e+00 : f32
    %118 = vector.broadcast %cst_42 : f32 to vector<16x192xf32>
    %119 = arith.addf %118, %117 : vector<16x192xf32>
    %120 = arith.mulf %114, %119 : vector<16x192xf32>
    %c0_43 = arith.constant 0 : index
    %c0_44 = arith.constant 0 : index
    %121 = vector.load %arg4[%c0_43, %c0_44] : memref<192x48xf32, #tpu.memory_space<vmem>>, vector<192x48xf32>
    %cst_45 = arith.constant dense<0.000000e+00> : vector<16x48xf32>
    %122 = tpu.matmul %120, %121, %cst_45 {dimension_numbers = #tpu.dot_dimension_numbers<[1], [0], [0], [1], [0, 0, 1, 1], [], []>} : vector<16x192xf32>, vector<192x48xf32>, vector<16x48xf32> -> vector<16x48xf32>
    %123 = vector.broadcast %6 : vector<1x48xf32> to vector<16x48xf32>
    %124 = arith.addf %122, %123 : vector<16x48xf32>
    %cst_46 = arith.constant dense<0.000000e+00> : vector<16xf32>
    %125 = vector.multi_reduction <add>, %124, %cst_46 [1] : vector<16x48xf32> to vector<16xf32>
    %126 = vector.shape_cast %125 : vector<16xf32> to vector<16x1xf32>
    %cst_47 = arith.constant 4.800000e+01 : f32
    %127 = vector.broadcast %cst_47 : f32 to vector<16x1xf32>
    %128 = arith.divf %126, %127 : vector<16x1xf32>
    %129 = vector.broadcast %128 : vector<16x1xf32> to vector<16x48xf32>
    %130 = arith.subf %124, %129 : vector<16x48xf32>
    %131 = arith.mulf %130, %130 : vector<16x48xf32>
    %cst_48 = arith.constant dense<0.000000e+00> : vector<16xf32>
    %132 = vector.multi_reduction <add>, %131, %cst_48 [1] : vector<16x48xf32> to vector<16xf32>
    %133 = vector.shape_cast %132 : vector<16xf32> to vector<16x1xf32>
    %cst_49 = arith.constant 4.800000e+01 : f32
    %134 = vector.broadcast %cst_49 : f32 to vector<16x1xf32>
    %135 = arith.divf %133, %134 : vector<16x1xf32>
    %136 = vector.broadcast %128 : vector<16x1xf32> to vector<16x48xf32>
    %137 = arith.subf %124, %136 : vector<16x48xf32>
    %cst_50 = arith.constant 9.99999974E-6 : f32
    %138 = vector.broadcast %cst_50 : f32 to vector<16x1xf32>
    %139 = arith.addf %135, %138 : vector<16x1xf32>
    %140 = math.rsqrt %139 : vector<16x1xf32>
    %141 = vector.broadcast %140 : vector<16x1xf32> to vector<16x48xf32>
    %142 = arith.mulf %137, %141 : vector<16x48xf32>
    %143 = vector.broadcast %7 : vector<1x48xf32> to vector<16x48xf32>
    %144 = arith.mulf %142, %143 : vector<16x48xf32>
    %145 = vector.broadcast %8 : vector<1x48xf32> to vector<16x48xf32>
    %146 = arith.addf %144, %145 : vector<16x48xf32>
    %147 = arith.addf %146, %108 : vector<16x48xf32>
    %c0_51 = arith.constant 0 : index
    %c0_52 = arith.constant 0 : index
    %148 = vector.load %arg6[%c0_51, %c0_52] : memref<16x48xf32, #tpu.memory_space<vmem>>, vector<16x48xf32>
    tpu.vector_store %arg6[%c0_51, %c0_52], %147 {strides = array<i32>} : memref<16x48xf32, #tpu.memory_space<vmem>>, vector<16x48xf32>,
    return
  }
  func.func @transform_0(%arg0: i32) -> (i32, i32) {
    %c0_i32 = arith.constant 0 : i32
    %c0_i32_0 = arith.constant 0 : i32
    return %arg0, %c0_i32 : i32, i32
  }
  func.func @transform_1(%arg0: i32) -> (i32, i32) {
    %c0_i32 = arith.constant 0 : i32
    %c0_i32_0 = arith.constant 0 : i32
    return %arg0, %c0_i32 : i32, i32
  }
  func.func @transform_2(%arg0: i32) -> (i32, i32) {
    %c0_i32 = arith.constant 0 : i32
    %c0_i32_0 = arith.constant 0 : i32
    %c0_i32_1 = arith.constant 0 : i32
    return %c0_i32, %c0_i32_0 : i32, i32
  }
  func.func @transform_3(%arg0: i32) -> (i32, i32) {
    %c0_i32 = arith.constant 0 : i32
    %c0_i32_0 = arith.constant 0 : i32
    %c0_i32_1 = arith.constant 0 : i32
    return %c0_i32, %c0_i32_0 : i32, i32
  }
  func.func @transform_4(%arg0: i32) -> (i32, i32) {
    %c0_i32 = arith.constant 0 : i32
    %c0_i32_0 = arith.constant 0 : i32
    %c0_i32_1 = arith.constant 0 : i32
    return %c0_i32, %c0_i32_0 : i32, i32
  }
  func.func @transform_5(%arg0: i32) -> (i32, i32) {
    %c0_i32 = arith.constant 0 : i32
    %c0_i32_0 = arith.constant 0 : i32
    return %arg0, %c0_i32 : i32, i32
  }
}

</mosaic_0001>

<bundles_post_ra>
// kernel: tpu_custom_call.1
= control target key start
LH: loop header
LB: loop body
LE: loop exit
PB: predicated region body
PF: predicated region fallthrough
CT: control target
= control target key end

     0   :  { %10 = vsyncpa [#allocation3], 0  ;;  %s2640_s0 = inlined_call_operand.vmem [shape: f32[16,48], index: 0, kind: input, shape index: {}]   ;;  %s2641_s1 = inlined_call_operand.vmem [shape: f32[32,48], index: 1, kind: input, shape index: {}]   ;;  %s2642_s2 = inlined_call_operand.vmem [shape: f32[48,640], index: 2, kind: input, shape index: {}]   ;;  %s2643_s3 = inlined_call_operand.vmem [shape: f32[192,48], index: 3, kind: input, shape index: {}]   ;;  %s2644_s4 = inlined_call_operand.hbm [shape: f32[8,192], index: 4, kind: input, shape index: {}]   ;;  %s2645_s5 = inlined_call_operand.hbm [shape: f32[16,48], index: 5, kind: output, shape index: {}]  }
   0x1   :  { %11 = vsyncpa [#allocation4], 0  ;;  %s2173_s18 = smov [#allocation2]  }
   0x2   :  { %s26_s19 = sshll.u32 %s2173_s18, 4  ;;  %s27_s19 = int_to_ptr.vmem [resolvable:$true] %s26_s19 }
   0x3   :  { %s2137_s20 = scalar_lea.vmem %s27_s19, 256  ;;  %p2142_p1 = scmp.lt.s32.totalorder %s27_s19, %s27_s19 }
   0x4   :  { %p2138_p0 = scmp.ne.s32.totalorder %s27_s19, %s2137_s20  ;;  %p2143_p2 = scmp.lt.s32.totalorder %s2137_s20, %s2137_s20 }
   0x6   :  { %p2144_p3 = por %p2143_p2, %p2142_p1 }
   0x8   :  { %p2145_p4 = pnand %p2144_p3, %p2138_p0 }
   0xa   :  { %2148 = shalt.err (!%p2145_p4)
}
   0xb   :  { %29 = dma.hbm_to_vmem [thread:$0]  %s2644_s4, 256, %s27_s19, [#allocation3]  }
   0xc   :  { %2169 = dma.done.wait [#allocation3], 256  }
   0xd   :  { %2170 = vsyncadd [#allocation3], 4294967040  ;;  %v52_v0 = vld [vmem:[%s2642_s2 + $0xc8] sm:$0xff]  ;;  %v51_v1 = vld [vmem:[%s2642_s2 + $0xa0] sm:$0xff]  ;;  %vm53_vm0 = vcmask 392192   ;;  %v2174_v18 = vmov 0.0  }
   0xe   :  { %1940 = vmatprep.subr.mxu1 %v52_v0  ;;  %v50_v2 = vld [vmem:[%s2642_s2 + $0x78] sm:$0xff]  ;;  %v2229_v3 = vld [vmem:[%s2640_s0] sm:$0xff]  ;;  %v49_v4 = vld [vmem:[%s2642_s2 + $0x50] sm:$0xff]  ;;  %1987 = vmatprep.subr.mxu0 %v2174_v18  ;;  %vm2175_vm1 = vmmov 0   ;;  %vm238_vm2 = vcmask 130048   ;;  %s2177_s6 = smov 112  }
   0xf   :  { %1941 = vmatpush3.msra.mxu1 %v52_v0  ;;  %1952 = vmatprep.mubr.msk.f32.mxu1 %vm53_vm0, %v2229_v3  ;;  %v48_v5 = vld [vmem:[%s2642_s2 + $0x28] sm:$0xff]  ;;  %v47_v6 = vld [vmem:[%s2642_s2] sm:$0xff]  ;;  %v140_v8 = vld [vmem:[%s2642_s2 + $0xd0] sm:$0xff]  ;;  %s2178_s7 = smov 64   ;;  %s2179_s8 = smov 96   ;;  %vm1701_vm3 = vcmask 523264  }
  0x10   :  { %1942 = vmatprep.subr.mxu1 %v51_v1  ;;  %v2245_v7 = vld [vmem:[%s2640_s0 + $0x8] sm:$0xff]  ;;  %v35_v9 = vld [vmem:[%s2641_s1] sm:$0xff]  ;;  %v137_v12 = vld [vmem:[%s2642_s2 + $0x58] sm:$0xff]  ;;  %1991 = vmatprep.mubr.msk.f32.mxu0 %vm2175_vm1, %v2174_v18  ;;  %s2180_s17 = smov 48  }
  0x11   :  { %1943 = vmatpush3.msra.mxu1 %v51_v1  ;;  %v139_v10 = vld [vmem:[%s2642_s2 + $0xa8] sm:$0xff]  ;;  %v138_v11 = vld [vmem:[%s2642_s2 + $0x80] sm:$0xff]  ;;  %v136_v13 = vld [vmem:[%s2642_s2 + $0x30] sm:$0xff] }
  0x12   :  { %1944 = vmatprep.subr.mxu1 %v50_v2  ;;  %v135_v14 = vld [vmem:[%s2642_s2 + $0x8] sm:$0xff]  ;;  %v37_v16 = vld [vmem:[%s2641_s1 + $0x10] sm:$0xff]  ;;  %v38_v17 = vld [vmem:[%s2641_s1 + $0x18] sm:$0xff] }
  0x13   :  { %1945 = vmatpush3.msra.mxu1 %v50_v2  ;;  %v36_v15 = vld [vmem:[%s2641_s1 + $0x8] sm:$0xff]  ;;  %v40_v21 = vld [vmem:[#allocation2 + $0x1] ss:$0 sm:$0xff]  ;;  %v39_v26 = vld [vmem:[#allocation2] ss:$0 sm:$0xff]  ;;  %s2176_s1 = smov 80  }
  0x14   :  { %1946 = vmatprep.subr.mxu1 %v49_v4 }
  0x15   :  { %1947 = vmatpush3.msra.mxu1 %v49_v4 }
  0x16   :  { %1948 = vmatprep.subr.mxu1 %v48_v5 }
  0x17   :  { %1949 = vmatpush3.msra.mxu1 %v48_v5 }
  0x18   :  { %1950 = vmatprep.subr.mxu1 %v47_v6 }
  0x19   :  { %1951 = vmatpush3.msra.mxu1 %v47_v6 }
  0x1a   :  { %1953 = vmatmul.mubr.msk.f32.vlgmr.msra.gmra.mxu1 %vm53_vm0, %v2245_v7  ;;  %1955 = vmatprep.subr.mxu1 %v140_v8 }
  0x1b   :  { %1956 = vmatpush3.msra.mxu1 %v140_v8  ;;  %1967 = vmatprep.mubr.msk.f32.mxu1 %vm53_vm0, %v35_v9 }
  0x1c   :  { %1957 = vmatprep.subr.mxu1 %v139_v10 }
  0x1d   :  { %1958 = vmatpush3.msra.mxu1 %v139_v10 }
  0x1e   :  { %1959 = vmatprep.subr.mxu1 %v138_v11 }
  0x1f   :  { %1960 = vmatpush3.msra.mxu1 %v138_v11 }
  0x20   :  { %1961 = vmatprep.subr.mxu1 %v137_v12 }
  0x21   :  { %1962 = vmatpush3.msra.mxu1 %v137_v12 }
  0x22   :  { %1963 = vmatprep.subr.mxu1 %v136_v13 }
  0x23   :  { %1964 = vmatpush3.msra.mxu1 %v136_v13 }
  0x24   :  { %1965 = vmatprep.subr.mxu1 %v135_v14 }
  0x25   :  { %1966 = vmatpush3.msra.mxu1 %v135_v14 }
  0x26   :  { %1968 = vmatmul.mubr.msk.f32.vlgmr.msra.gmra.mxu1 %vm53_vm0, %v36_v15  ;;  %1973 = vmatprep.subr.mxu1 %v2174_v18 }
  0x27   :  { %1970 = vmatprep.mubr.msk.f32.mxu1 %vm53_vm0, %v37_v16 }
  0x2a   :  { %1971 = vmatmul.mubr.msk.f32.gmra.mxu1 %vm53_vm0, %v38_v17 }
  0x2b   :  { %1977 = vmatprep.mubr.msk.f32.mxu1 %vm2175_vm1, %v2174_v18 }
  0xda   :  { %v1954_v19 = vpop.f32.mrf.mxu1 }
  0xdb   :  { %v2320_v32 = vadd.f32 %v1954_v19, %v39_v26 }
  0xdc   :  { %v126_v20 = vpop.f32.mrf.mxu1 }
  0xdd   :  { %v2302_v29 = vadd.f32 %v126_v20, %v39_v26 }
  0xe6   :  { %v1969_v22 = vpop.f32.mrf.mxu1 }
  0xe7   :  { %v2289_v23 = vadd.f32 %v1969_v22, %v40_v21 }
  0xe8   :  { %v219_v24 = vpop.f32.mrf.mxu1 }
  0xe9   :  { %1974 = vmatpush3.xpose.msk.msra.mxu1 %vm238_vm2, %v2289_v23  ;;  %v2294_v27 = vadd.f32 %v219_v24, %v40_v21 }
  0xea   :  { %v1972_v25 = vpop.f32.mrf.mxu1  ;;  %1975 = vmatprep.subr.mxu1 %v2174_v18 }
  0xeb   :  { %v2296_v28 = vadd.f32 %v1972_v25, %v40_v21 }
  0xec   :  { %v229_v30 = vpop.f32.mrf.mxu1 }
  0xed   :  { %500 = vrot.lane.b32.xlu1 %v2296_v28, %s2176_s1  ;;  %1976 = vmatpush3.xpose.msk.msra.mxu1 %vm238_vm2, %v2294_v27  ;;  %v2314_v31 = vadd.f32 %v229_v30, %v40_v21 }
  0xee   :  { %1980 = vmatprep.subr.mxu1 %v2174_v18 }
  0xf0   :  { %1978 = vmatmul.mubr.msk.f32.vlgmr.msra.gmra.mxu1 %vm238_vm2, %v2302_v29 }
  0xf1   :  { %419 = vrot.lane.b32.xlu1 %v2294_v27, %s2176_s1  ;;  %1981 = vmatpush3.xpose.msk.msra.mxu1 %vm238_vm2, %v2296_v28 }
  0xf2   :  { %1982 = vmatprep.subr.mxu1 %v2174_v18  ;;  %1984 = vmatprep.mubr.msk.f32.mxu1 %vm2175_vm1, %v2174_v18 }
  0xf5   :  { %498 = vrot.lane.b32.xlu1 %v2314_v31, %s2176_s1  ;;  %1983 = vmatpush3.xpose.msk.msra.mxu1 %vm238_vm2, %v2314_v31 }
  0xf6   :  { %1994 = vmatprep.subr.mxu1 %v2174_v18 }
  0xf8   :  { %1985 = vmatmul.mubr.msk.f32.vlgmr.msra.gmra.mxu1 %vm238_vm2, %v2320_v32 }
  0xf9   :  { %665 = vrot.lane.b32.xlu1 %v2296_v28, %s2177_s6  ;;  %1998 = vmatprep.mubr.msk.f32.mxu1 %vm2175_vm1, %v2174_v18 }
  0xfd   :  { %663 = vrot.lane.b32.xlu1 %v2314_v31, %s2177_s6 }
 0x15f   :  { %v501_v33 = vpop.permute.xlu1 %500 }
 0x160   :  { %1995 = vmatpush3.msra.mxu1 %v501_v33 }
 0x161   :  { %1996 = vmatprep.subr.mxu1 %v2174_v18 }
 0x163   :  { %v420_v34 = vpop.permute.xlu1 %419 }
 0x167   :  { %v499_v35 = vpop.permute.xlu1 %498 }
 0x168   :  { %1997 = vmatpush3.msra.mxu1 %v499_v35 }
 0x169   :  { %2008 = vmatprep.subr.mxu1 %v2174_v18 }
 0x16b   :  { %v666_v53 = vpop.permute.xlu1 %665 }
 0x16f   :  { %v664_v54 = vpop.permute.xlu1 %663 }
 0x1b0   :  { %v314_v36 = vpop.f32.mrf.mxu1 }
 0x1b1   :  { %v397_v37 = vsel %vm238_vm2, %v314_v36, -inf }
 0x1b2   :  { %398 = vmax.xlane.f32.xlu0 %v397_v37  ;;  %v1979_v38 = vpop.f32.mrf.mxu1 }
 0x1b8   :  { %v393_v39 = vpop.f32.mrf.mxu1 }
 0x1b9   :  { %v400_v40 = vsel %vm238_vm2, %v393_v39, -inf }
 0x1ba   :  { %401 = vmax.xlane.f32.xlu0 %v400_v40  ;;  %v1986_v41 = vpop.f32.mrf.mxu1 }
 0x1d0   :  { %421 = vrot.lane.b32.xlu0 %v2289_v23, %s2176_s1 }
 0x1d4   :  { %583 = vrot.lane.b32.xlu0 %v2289_v23, %s2177_s6 }
 0x1d8   :  { %581 = vrot.lane.b32.xlu0 %v2294_v27, %s2177_s6 }
 0x1dc   :  { %579 = vrot.lane.b32.xlu0 %v2302_v29, %s2177_s6 }
 0x23b   :  { %v399_v42 = vpop.xlane.xlu0 %398 }
 0x23c   :  { %v403_v43 = vsub.f32 %v314_v36, %v399_v42 }
 0x23e   :  { %v405_v44 = vmul.f32 1.442695, %v403_v43  ;;  %v924_v43 = vld [vmem:[%s2642_s2 + $0x88] sm:$0xff] }
 0x240   :  { %2089 = vpow2.f32 %v405_v44  ;;  %v923_v44 = vld [vmem:[%s2642_s2 + $0x60] sm:$0xff] }
 0x243   :  { %v402_v45 = vpop.xlane.xlu0 %401 }
 0x244   :  { %v404_v46 = vsub.f32 %v393_v39, %v402_v45 }
 0x246   :  { %v407_v47 = vmul.f32 1.442695, %v404_v46 }
 0x247   :  { %v422_v48 = vpop.permute.xlu0 %421 }
 0x248   :  { %2091 = vpow2.f32 %v407_v47  ;;  %1988 = vmatpush3.msra.mxu0 %v422_v48 }
 0x249   :  { %1989 = vmatprep.subr.mxu0 %v2174_v18 }
 0x24a   :  { %1990 = vmatpush3.msra.mxu0 %v420_v34 }
 0x24b   :  { %2001 = vmatprep.subr.mxu0 %v2174_v18  ;;  %v584_v57 = vpop.permute.xlu0 %583 }
 0x24d   :  { %v2090_v49 = vpop.eup %2089 }
 0x24e   :  { %v409_v50 = vsel %vm238_vm2, %v2090_v49, 0.0 }
 0x24f   :  { %410 = vadd.xlane.f32.xlu1 %v409_v50  ;;  %v582_v60 = vpop.permute.xlu0 %581 }
 0x253   :  { %v580_v63 = vpop.permute.xlu0 %579 }
 0x255   :  { %v2092_v51 = vpop.eup %2091 }
 0x256   :  { %v412_v52 = vsel %vm238_vm2, %v2092_v51, 0.0 }
 0x257   :  { %413 = vadd.xlane.f32.xlu1 %v412_v52 }
 0x268   :  { %661 = vrot.lane.b32.xlu1 %v2320_v32, %s2177_s6 }
 0x2d8   :  { %v411_v55 = vpop.xlane.xlu1 %410 }
 0x2d9   :  { %2093 = vrcp.f32 %v411_v55 }
 0x2e0   :  { %v414_v56 = vpop.xlane.xlu1 %413 }
 0x2e1   :  { %2095 = vrcp.f32 %v414_v56 }
 0x2e4   :  { %v662_v0 = vpop.permute.xlu1 %661 }
 0x2e6   :  { %v2094_v58 = vpop.eup %2093 }
 0x2e7   :  { %v417_v59 = vmul.f32 %v2094_v58, %v2090_v49 }
 0x2e9   :  { %1992 = vmatmul.mubr.msk.f32.vlgmr.msra.gmra.mxu0 %vm238_vm2, %v417_v59 }
 0x2ea   :  { %2002 = vmatpush3.xpose.msk.msra.mxu0 %vm238_vm2, %v584_v57  ;;  %2005 = vmatprep.mubr.msk.f32.mxu0 %vm2175_vm1, %v2174_v18 }
 0x2eb   :  { %2003 = vmatprep.subr.mxu0 %v2174_v18 }
 0x2ee   :  { %v2096_v61 = vpop.eup %2095  ;;  %2004 = vmatpush3.xpose.msk.msra.mxu0 %vm238_vm2, %v582_v60 }
 0x2ef   :  { %v418_v62 = vmul.f32 %v2096_v61, %v2092_v51  ;;  %2015 = vmatprep.subr.mxu0 %v2174_v18 }
 0x2f1   :  { %2006 = vmatmul.mubr.msk.f32.vlgmr.msra.gmra.mxu0 %vm238_vm2, %v580_v63  ;;  %1999 = vmatmul.mubr.msk.f32.vlgmr.msra.gmra.mxu1 %vm238_vm2, %v418_v62 }
 0x2f2   :  { %2009 = vmatpush3.xpose.msk.msra.mxu1 %vm238_vm2, %v666_v53  ;;  %2012 = vmatprep.mubr.msk.f32.mxu1 %vm2175_vm1, %v2174_v18 }
 0x2f3   :  { %2010 = vmatprep.subr.mxu1 %v2174_v18  ;;  %2019 = vmatprep.mubr.msk.f32.mxu0 %vm2175_vm1, %v2174_v18 }
 0x2f6   :  { %2011 = vmatpush3.xpose.msk.msra.mxu1 %vm238_vm2, %v664_v54 }
 0x2f7   :  { %2022 = vmatprep.subr.mxu1 %v2174_v18 }
 0x2f9   :  { %2013 = vmatmul.mubr.msk.f32.vlgmr.msra.gmra.mxu1 %vm238_vm2, %v662_v0 }
 0x2fa   :  { %2026 = vmatprep.mubr.msk.f32.mxu1 %vm2175_vm1, %v2174_v18 }
 0x3a9   :  { %v2369_v1 = vpop.f32.mrf.mxu0 }
 0x3ab   :  { %v1993_v2 = vpop.f32.mrf.mxu0 }
 0x3b1   :  { %v657_v4 = vpop.f32.mrf.mxu0  ;;  %v2371_v5 = vpop.f32.mrf.mxu1 }
 0x3b2   :  { %v743_v6 = vsel %vm238_vm2, %v657_v4, -inf }
 0x3b3   :  { %744 = vmax.xlane.f32.xlu0 %v743_v6  ;;  %v2007_v8 = vpop.f32.mrf.mxu0  ;;  %v2000_v9 = vpop.f32.mrf.mxu1 }
 0x3b9   :  { %v739_v10 = vpop.f32.mrf.mxu1 }
 0x3ba   :  { %v746_v11 = vsel %vm238_vm2, %v739_v10, -inf }
 0x3bb   :  { %747 = vmax.xlane.f32.xlu1 %v746_v11  ;;  %v2014_v12 = vpop.f32.mrf.mxu1 }
 0x3cc   :  { %846 = vrot.lane.b32.xlu1 %v2296_v28, %s2178_s7 }
 0x3d0   :  { %765 = vrot.lane.b32.xlu1 %v2294_v27, %s2178_s7 }
 0x3d4   :  { %844 = vrot.lane.b32.xlu1 %v2314_v31, %s2178_s7 }
 0x3d8   :  { %1173 = vrot.lane.b32.xlu1 %v2296_v28, %s2179_s8 }
 0x3dc   :  { %1171 = vrot.lane.b32.xlu1 %v2314_v31, %s2179_s8 }
 0x3e0   :  { %1169 = vrot.lane.b32.xlu1 %v2320_v32, %s2179_s8  ;;  %v578_v32 = vld [vmem:[%s2642_s2 + $0x38] sm:$0xff] }
 0x43c   :  { %v745_v13 = vpop.xlane.xlu0 %744 }
 0x43d   :  { %v749_v14 = vsub.f32 %v657_v4, %v745_v13 }
 0x43f   :  { %v751_v15 = vmul.f32 1.442695, %v749_v14 }
 0x441   :  { %2097 = vpow2.f32 %v751_v15  ;;  %v1432_v15 = vld [vmem:[%s2642_s2 + $0xd8] sm:$0xff] }
 0x444   :  { %v748_v16 = vpop.xlane.xlu1 %747 }
 0x445   :  { %v750_v17 = vsub.f32 %v739_v10, %v748_v16 }
 0x447   :  { %v753_v19 = vmul.f32 1.442695, %v750_v17 }
 0x448   :  { %v847_v20 = vpop.permute.xlu1 %846 }
 0x449   :  { %2099 = vpow2.f32 %v753_v19  ;;  %2023 = vmatpush3.msra.mxu1 %v847_v20  ;;  %v1431_v19 = vld [vmem:[%s2642_s2 + $0xb0] sm:$0xff] }
 0x44a   :  { %2024 = vmatprep.subr.mxu1 %v2174_v18 }
 0x44c   :  { %v766_v21 = vpop.permute.xlu1 %765 }
 0x44e   :  { %v2098_v22 = vpop.eup %2097 }
 0x44f   :  { %v755_v24 = vsel %vm238_vm2, %v2098_v22, 0.0 }
 0x450   :  { %756 = vadd.xlane.f32.xlu0 %v755_v24  ;;  %v845_v25 = vpop.permute.xlu1 %844 }
 0x451   :  { %2025 = vmatpush3.msra.mxu1 %v845_v25 }
 0x452   :  { %2036 = vmatprep.subr.mxu1 %v578_v32 }
 0x454   :  { %v1174_v40 = vpop.permute.xlu1 %1173 }
 0x456   :  { %v2100_v26 = vpop.eup %2099 }
 0x457   :  { %v758_v30 = vsel %vm238_vm2, %v2100_v26, 0.0 }
 0x458   :  { %759 = vadd.xlane.f32.xlu0 %v758_v30  ;;  %v1172_v41 = vpop.permute.xlu1 %1171 }
 0x45c   :  { %v1170_v42 = vpop.permute.xlu1 %1169 }
 0x46e   :  { %767 = vrot.lane.b32.xlu0 %v2289_v23, %s2178_s7 }
 0x472   :  { %1091 = vrot.lane.b32.xlu0 %v2289_v23, %s2179_s8 }
 0x476   :  { %1089 = vrot.lane.b32.xlu0 %v2294_v27, %s2179_s8 }
 0x47a   :  { %1087 = vrot.lane.b32.xlu0 %v2302_v29, %s2179_s8  ;;  %v577_v29 = vld [vmem:[%s2642_s2 + $0x10] sm:$0xff] }
 0x4d9   :  { %v757_v33 = vpop.xlane.xlu0 %756 }
 0x4da   :  { %2101 = vrcp.f32 %v757_v33 }
 0x4e1   :  { %v760_v34 = vpop.xlane.xlu0 %759 }
 0x4e2   :  { %2103 = vrcp.f32 %v760_v34 }
 0x4e5   :  { %v768_v35 = vpop.permute.xlu0 %767 }
 0x4e6   :  { %2016 = vmatpush3.msra.mxu0 %v768_v35 }
 0x4e7   :  { %v2102_v36 = vpop.eup %2101  ;;  %2017 = vmatprep.subr.mxu0 %v2174_v18 }
 0x4e8   :  { %2018 = vmatpush3.msra.mxu0 %v766_v21  ;;  %v763_v37 = vmul.f32 %v2102_v36, %v2098_v22 }
 0x4e9   :  { %2029 = vmatprep.subr.mxu0 %v924_v43  ;;  %v1092_v47 = vpop.permute.xlu0 %1091 }
 0x4ea   :  { %2020 = vmatmul.mubr.msk.f32.vlgmr.msra.gmra.mxu0 %vm238_vm2, %v763_v37 }
 0x4eb   :  { %2030 = vmatpush3.msra.mxu0 %v924_v43 }
 0x4ec   :  { %2031 = vmatprep.subr.mxu0 %v923_v44 }
 0x4ed   :  { %2032 = vmatpush3.msra.mxu0 %v923_v44  ;;  %v1090_v49 = vpop.permute.xlu0 %1089 }
 0x4ee   :  { %2043 = vmatprep.subr.mxu0 %v2174_v18 }
 0x4ef   :  { %v2104_v38 = vpop.eup %2103 }
 0x4f0   :  { %v764_v39 = vmul.f32 %v2104_v38, %v2100_v26  ;;  %v41_v26 = vld [vmem:[#allocation2 + $0x2] ss:$0 sm:$0xff] }
 0x4f1   :  { %v1088_v52 = vpop.permute.xlu0 %1087 }
 0x4f2   :  { %2027 = vmatmul.mubr.msk.f32.vlgmr.msra.gmra.mxu1 %vm238_vm2, %v764_v39 }
 0x4f3   :  { %2037 = vmatpush3.msra.mxu1 %v578_v32  ;;  %2040 = vmatprep.mubr.msk.f32.mxu1 %vm238_vm2, %v2369_v1 }
 0x4f4   :  { %2038 = vmatprep.subr.mxu1 %v577_v29 }
 0x4f5   :  { %2039 = vmatpush3.msra.mxu1 %v577_v29 }
 0x4f6   :  { %2050 = vmatprep.subr.mxu1 %v2174_v18  ;;  %2041 = vmatmul.mubr.msk.f32.vlgmr.msra.gmra.mxu1 %vm238_vm2, %v2371_v5 }
 0x4f7   :  { %2051 = vmatpush3.xpose.msk.msra.mxu1 %vm238_vm2, %v1174_v40  ;;  %2054 = vmatprep.mubr.msk.f32.mxu1 %vm2175_vm1, %v2174_v18 }
 0x4f8   :  { %2052 = vmatprep.subr.mxu1 %v2174_v18 }
 0x4fb   :  { %2053 = vmatpush3.xpose.msk.msra.mxu1 %vm238_vm2, %v1172_v41 }
 0x4fc   :  { %2064 = vmatprep.subr.mxu1 %v2174_v18 }
 0x4fe   :  { %2055 = vmatmul.mubr.msk.f32.vlgmr.msra.gmra.mxu1 %vm238_vm2, %v1170_v42 }
 0x4ff   :  { %2068 = vmatprep.mubr.msk.f32.mxu1 %vm2175_vm1, %v2174_v18 }
 0x5aa   :  { %v840_v45 = vpop.f32.mrf.mxu0 }
 0x5ab   :  { %2033 = vmatprep.mubr.msk.f32.mxu0 %vm238_vm2, %v840_v45 }
 0x5ac   :  { %v2021_v46 = vpop.f32.mrf.mxu0 }
 0x5b2   :  { %v919_v48 = vpop.f32.mrf.mxu1 }
 0x5b3   :  { %2034 = vmatmul.mubr.msk.f32.vlgmr.msra.gmra.mxu0 %vm238_vm2, %v919_v48  ;;  %v1562_v48 = vld [vmem:[%s2642_s2 + $0xe8] sm:$0xff] }
 0x5b4   :  { %2044 = vmatpush3.xpose.msk.msra.mxu0 %vm238_vm2, %v1092_v47  ;;  %v2028_v50 = vpop.f32.mrf.mxu1  ;;  %2047 = vmatprep.mubr.msk.f32.mxu0 %vm2175_vm1, %v2174_v18 }
 0x5b5   :  { %2045 = vmatprep.subr.mxu0 %v2174_v18  ;;  %v1560_v50 = vld [vmem:[%s2642_s2 + $0xc0] sm:$0xff] }
 0x5b6   :  { %v2424_v51 = vpop.f32.mrf.mxu1 }
 0x5b8   :  { %2046 = vmatpush3.xpose.msk.msra.mxu0 %vm238_vm2, %v1090_v49  ;;  %v2429_v53 = vpop.f32.mrf.mxu1  ;;  %v1561_v49 = vld [vmem:[%s2642_s2 + $0xe0] sm:$0xff] }
 0x5b9   :  { %2057 = vmatprep.subr.mxu0 %v2174_v18 }
 0x5bb   :  { %2048 = vmatmul.mubr.msk.f32.vlgmr.msra.gmra.mxu0 %vm238_vm2, %v1088_v52  ;;  %v1558_v52 = vld [vmem:[%s2642_s2 + $0x98] sm:$0xff] }
 0x5bc   :  { %2061 = vmatprep.mubr.msk.f32.mxu0 %vm2175_vm1, %v2174_v18 }
 0x5be   :  { %v1247_v54 = vpop.f32.mrf.mxu1 }
 0x5bf   :  { %v1254_v55 = vsel %vm238_vm2, %v1247_v54, -inf }
 0x5c0   :  { %1255 = vmax.xlane.f32.xlu1 %v1254_v55  ;;  %v2056_v56 = vpop.f32.mrf.mxu1  ;;  %v1555_v55 = vld [vmem:[%s2642_s2 + $0x68] sm:$0xff] }
 0x5c1   :  { %v1554_v56 = vld [vmem:[%s2642_s2 + $0x48] sm:$0xff] }
 0x5d1   :  { %1354 = vrot.lane.b32.xlu1 %v2296_v28, %s2180_s17 }
 0x5d5   :  { %1273 = vrot.lane.b32.xlu1 %v2294_v27, %s2180_s17 }
 0x5d9   :  { %1352 = vrot.lane.b32.xlu1 %v2314_v31, %s2180_s17 }
 0x649   :  { %v1256_v57 = vpop.xlane.xlu1 %1255 }
 0x64a   :  { %v1258_v61 = vsub.f32 %v1247_v54, %v1256_v57  ;;  %v1556_v54 = vld [vmem:[%s2642_s2 + $0x70] sm:$0xff]  ;;  %v1553_v57 = vld [vmem:[%s2642_s2 + $0x40] sm:$0xff] }
 0x64c   :  { %v1261_v62 = vmul.f32 1.442695, %v1258_v61  ;;  %v1691_v61 = vld [vmem:[%s2643_s3 + $0x70] sm:$0xff] }
 0x64d   :  { %v1355_v58 = vpop.permute.xlu1 %1354 }
 0x64e   :  { %2065 = vmatpush3.msra.mxu1 %v1355_v58  ;;  %2105 = vpow2.f32 %v1261_v62  ;;  %v1552_v58 = vld [vmem:[%s2642_s2 + $0x20] sm:$0xff]  ;;  %v1690_v62 = vld [vmem:[%s2643_s3 + $0x68] sm:$0xff] }
 0x64f   :  { %2066 = vmatprep.subr.mxu1 %v2174_v18 }
 0x651   :  { %v1274_v59 = vpop.permute.xlu1 %1273 }
 0x655   :  { %v1353_v60 = vpop.permute.xlu1 %1352 }
 0x656   :  { %2067 = vmatpush3.msra.mxu1 %v1353_v60  ;;  %v1692_v60 = vld [vmem:[%s2643_s3 + $0x78] sm:$0xff] }
 0x657   :  { %1600 = vmatprep.subr.mxu1 %v1562_v48 }
 0x65b   :  { %v2106_v27 = vpop.eup %2105 }
 0x65c   :  { %v1266_v31 = vsel %vm238_vm2, %v2106_v27, 0.0 }
 0x673   :  { %v2035_v63 = vpop.f32.mrf.mxu0 }
 0x674   :  { %v1084_v24 = vadd.f32 %v2424_v51, %v2035_v63  ;;  %v1559_v51 = vld [vmem:[%s2642_s2 + $0xb8] sm:$0xff]  ;;  %v1689_v63 = vld [vmem:[%s2643_s3 + $0x60] sm:$0xff] }
 0x675   :  { %v997_v0 = vpop.f32.mrf.mxu0 }
 0x676   :  { %v1079_v30 = vadd.f32 %v2429_v53, %v997_v0  ;;  %v1557_v53 = vld [vmem:[%s2642_s2 + $0x90] sm:$0xff]  ;;  %v1688_v0 = vld [vmem:[%s2643_s3 + $0x58] sm:$0xff] }
 0x67b   :  { %v1165_v28 = vpop.f32.mrf.mxu0 }
 0x67c   :  { %v1251_v1 = vsel %vm238_vm2, %v1165_v28, -inf }
 0x67d   :  { %1252 = vmax.xlane.f32.xlu0 %v1251_v1  ;;  %v2049_v2 = vpop.f32.mrf.mxu0  ;;  %v1686_v1 = vld [vmem:[%s2643_s3 + $0x48] sm:$0xff] }
 0x67e   :  { %v1684_v2 = vld [vmem:[%s2643_s3 + $0x38] sm:$0xff] }
 0x681   :  { %1267 = vadd.xlane.f32.xlu0 %v1266_v31  ;;  %v1683_v31 = vld [vmem:[%s2643_s3 + $0x30] sm:$0xff] }
 0x706   :  { %v1253_v4 = vpop.xlane.xlu0 %1252 }
 0x707   :  { %v1257_v5 = vsub.f32 %v1165_v28, %v1253_v4  ;;  %v1687_v28 = vld [vmem:[%s2643_s3 + $0x50] sm:$0xff]  ;;  %v1682_v4 = vld [vmem:[%s2643_s3 + $0x28] sm:$0xff] }
 0x709   :  { %v1259_v6 = vmul.f32 1.442695, %v1257_v5 }
 0x70a   :  { %v1268_v8 = vpop.xlane.xlu0 %1267 }
 0x70b   :  { %2107 = vpow2.f32 %v1259_v6 }
 0x70c   :  { %2109 = vrcp.f32 %v1268_v8 }
 0x718   :  { %v2108_v9 = vpop.eup %2107 }
 0x719   :  { %v2110_v10 = vpop.eup %2109  ;;  %v1263_v11 = vsel %vm238_vm2, %v2108_v9, 0.0 }
 0x71a   :  { %1264 = vadd.xlane.f32.xlu0 %v1263_v11  ;;  %v1272_v12 = vmul.f32 %v2110_v10, %v2106_v27  ;;  %v1685_v27 = vld [vmem:[%s2643_s3 + $0x40] sm:$0xff] }
 0x71c   :  { %2069 = vmatmul.mubr.msk.f32.vlgmr.msra.gmra.mxu1 %vm238_vm2, %v1272_v12 }
 0x71d   :  { %1644 = vmatprep.mubr.f32.mxu1 %v2174_v18  ;;  %1601 = vmatpush1.msra.mxu1 %v1561_v49 }
 0x71e   :  { %1602 = vmatprep.subr.mxu1 %v1560_v50 }
 0x71f   :  { %1603 = vmatpush1.msra.mxu1 %v1559_v51 }
 0x720   :  { %1604 = vmatprep.subr.mxu1 %v1558_v52 }
 0x721   :  { %1605 = vmatpush1.msra.mxu1 %v1557_v53 }
 0x722   :  { %1606 = vmatprep.subr.mxu1 %v1556_v54 }
 0x723   :  { %1607 = vmatpush1.msra.mxu1 %v1555_v55 }
 0x724   :  { %1608 = vmatprep.subr.mxu1 %v1554_v56 }
 0x725   :  { %1609 = vmatpush1.msra.mxu1 %v1553_v57 }
 0x726   :  { %1610 = vmatprep.subr.mxu1 %v1552_v58 }
 0x730   :  { %1275 = vrot.lane.b32.xlu0 %v2289_v23, %s2180_s17 }
 0x7a3   :  { %v1265_v13 = vpop.xlane.xlu0 %1264 }
 0x7a4   :  { %2111 = vrcp.f32 %v1265_v13  ;;  %v2553_v13 = vld [vmem:[#allocation2 + $0x5] ss:$0 sm:$0xff] }
 0x7a7   :  { %v1276_v14 = vpop.permute.xlu0 %1275 }
 0x7a8   :  { %2058 = vmatpush3.msra.mxu0 %v1276_v14 }
 0x7a9   :  { %2059 = vmatprep.subr.mxu0 %v2174_v18 }
 0x7aa   :  { %2060 = vmatpush3.msra.mxu0 %v1274_v59  ;;  %v1551_v59 = vld [vmem:[%s2642_s2 + $0x18] sm:$0xff] }
 0x7ab   :  { %2071 = vmatprep.subr.mxu0 %v1432_v15  ;;  %1611 = vmatpush1.msra.mxu1 %v1551_v59 }
 0x7b1   :  { %v2112_v16 = vpop.eup %2111 }
 0x7b2   :  { %v1271_v17 = vmul.f32 %v2112_v16, %v2108_v9 }
 0x7b4   :  { %2062 = vmatmul.mubr.msk.f32.vlgmr.msra.gmra.mxu0 %vm238_vm2, %v1271_v17 }
 0x7b5   :  { %2072 = vmatpush3.msra.mxu0 %v1432_v15  ;;  %v2556_v15 = vld [vmem:[#allocation2 + $0x6] ss:$0 sm:$0xff] }
 0x7b6   :  { %2073 = vmatprep.subr.mxu0 %v1431_v19 }
 0x7b7   :  { %2074 = vmatpush3.msra.mxu0 %v1431_v19 }
 0x7b8   :  { %1708 = vmatprep.subr.mxu0 %v2174_v18 }
 0x7dc   :  { %v1427_v23 = vpop.f32.mrf.mxu1 }
 0x7de   :  { %v2070_v20 = vpop.f32.mrf.mxu1 }
 0x874   :  { %v1348_v21 = vpop.f32.mrf.mxu0 }
 0x875   :  { %2075 = vmatprep.mubr.msk.f32.mxu0 %vm238_vm2, %v1348_v21 }
 0x876   :  { %v2063_v22 = vpop.f32.mrf.mxu0  ;;  %2076 = vmatmul.mubr.msk.f32.vlgmr.msra.gmra.mxu0 %vm238_vm2, %v1427_v23 }
 0x877   :  { %1709 = vmatpush1.msra.mxu0 %v1692_v60 }
 0x878   :  { %1710 = vmatprep.subr.mxu0 %v2174_v18 }
 0x879   :  { %1711 = vmatpush1.msra.mxu0 %v1691_v61 }
 0x87a   :  { %1712 = vmatprep.subr.mxu0 %v2174_v18 }
 0x87b   :  { %1713 = vmatpush1.msra.mxu0 %v1690_v62 }
 0x87c   :  { %1714 = vmatprep.subr.mxu0 %v2174_v18 }
 0x87d   :  { %1715 = vmatpush1.msra.mxu0 %v1689_v63 }
 0x87e   :  { %1716 = vmatprep.subr.mxu0 %v2174_v18 }
 0x87f   :  { %1717 = vmatpush1.msra.mxu0 %v1688_v0 }
 0x880   :  { %1718 = vmatprep.subr.mxu0 %v2174_v18 }
 0x881   :  { %1719 = vmatpush1.msra.mxu0 %v1687_v28 }
 0x882   :  { %1720 = vmatprep.subr.mxu0 %v2174_v18 }
 0x883   :  { %1721 = vmatpush1.msra.mxu0 %v1686_v1 }
 0x884   :  { %1722 = vmatprep.subr.mxu0 %v2174_v18 }
 0x885   :  { %1723 = vmatpush1.msra.mxu0 %v1685_v27 }
 0x886   :  { %1724 = vmatprep.subr.mxu0 %v2174_v18 }
 0x887   :  { %1725 = vmatpush1.msra.mxu0 %v1684_v2 }
 0x888   :  { %1726 = vmatprep.subr.mxu0 %v2174_v18 }
 0x889   :  { %1727 = vmatpush1.msra.mxu0 %v1683_v31 }
 0x88a   :  { %1728 = vmatprep.subr.mxu0 %v2174_v18 }
 0x88b   :  { %1729 = vmatpush1.msra.mxu0 %v1682_v4 }
 0x88c   :  { %1730 = vmatprep.subr.mxu0 %v2174_v18 }
 0x936   :  { %v2077_v25 = vpop.f32.mrf.mxu0 }
 0x937   :  { %v1515_v32 = vadd.f32 %v2077_v25, %v1084_v24  ;;  %v1680_v25 = vld [vmem:[%s2643_s3 + $0x18] sm:$0xff] }
 0x938   :  { %v1505_v33 = vpop.f32.mrf.mxu0 }
 0x939   :  { %v1514_v34 = vadd.f32 %v1505_v33, %v1079_v30  ;;  %v1517_v35 = vadd.f32 %v1515_v32, %v41_v26  ;;  %v1677_v30 = vld [vmem:[%s2643_s3] sm:$0xff]  ;;  %v1700_v32 = vld [vmem:[%s2643_s3 + $0xb8] sm:$0xff]  ;;  %v1699_v33 = vld [vmem:[%s2643_s3 + $0xb0] sm:$0xff] }
 0x93b   :  { %v1521_v36 = vsel %vm53_vm0, %v1517_v35, 0.0  ;;  %v1516_v37 = vadd.f32 %v1514_v34, %v41_v26  ;;  %v1678_v26 = vld [vmem:[%s2643_s3 + $0x8] sm:$0xff] }
 0x93c   :  { %1522 = vadd.xlane.f32.xlu1 %v1521_v36  ;;  %v1698_v34 = vld [vmem:[%s2643_s3 + $0xa8] sm:$0xff]  ;;  %v1696_v36 = vld [vmem:[%s2643_s3 + $0x98] sm:$0xff] }
 0x93d   :  { %v1518_v38 = vsel %vm53_vm0, %v1516_v37, 0.0 }
 0x93e   :  { %1519 = vadd.xlane.f32.xlu0 %v1518_v38  ;;  %v1694_v38 = vld [vmem:[%s2643_s3 + $0x88] sm:$0xff] }
 0x9c5   :  { %v1523_v39 = vpop.xlane.xlu1 %1522 }
 0x9c6   :  { %v1526_v40 = vmul.f32 0.020833334, %v1523_v39  ;;  %v1693_v39 = vld [vmem:[%s2643_s3 + $0x80] sm:$0xff] }
 0x9c7   :  { %v1520_v29 = vpop.xlane.xlu0 %1519 }
 0x9c8   :  { %v1525_v41 = vmul.f32 0.020833334, %v1520_v29  ;;  %v2463_v42 = vsub.f32 %v1517_v35, %v1526_v40  ;;  %v1697_v35 = vld [vmem:[%s2643_s3 + $0xa0] sm:$0xff]  ;;  %v1564_v40 = vlaneseq }
 0x9ca   :  { %v2465_v43 = vsub.f32 %v1516_v37, %v1525_v41  ;;  %v1530_v46 = vmul.f32 %v2463_v42, %v2463_v42  ;;  %v1695_v37 = vld [vmem:[%s2643_s3 + $0x90] sm:$0xff]  ;;  %v1565_v29 = vshrl.u32 %v1564_v40, 7 }
 0x9cc   :  { %v1529_v44 = vmul.f32 %v2465_v43, %v2465_v43  ;;  %v1534_v47 = vsel %vm53_vm0, %v1530_v46, 0.0  ;;  %v1566_v41 = vsub.s32 0, %v1565_v29 }
 0x9ce   :  { %v1531_v45 = vsel %vm53_vm0, %v1529_v44, 0.0 }
 0x9cf   :  { %1532 = vadd.xlane.f32.xlu0 %v1531_v45 }
 0x9d3   :  { %1535 = vadd.xlane.f32.xlu0 %v1534_v47 }
 0xa58   :  { %v1533_v5 = vpop.xlane.xlu0 %1532 }
 0xa59   :  { %v1537_v6 = vmul.f32 0.020833334, %v1533_v5 }
 0xa5b   :  { %v1539_v8 = vadd.f32 1e-05, %v1537_v6 }
 0xa5c   :  { %v1536_v9 = vpop.xlane.xlu0 %1535 }
 0xa5d   :  { %2113 = vrsqrt.f32 %v1539_v8  ;;  %v1538_v10 = vmul.f32 0.020833334, %v1536_v9  ;;  %v44_v8 = vld [vmem:[#allocation2 + $0x4] ss:$0 sm:$0xff] }
 0xa5f   :  { %v1540_v11 = vadd.f32 1e-05, %v1538_v10 }
 0xa61   :  { %2115 = vrsqrt.f32 %v1540_v11 }
 0xa6a   :  { %v2114_v12 = vpop.eup %2113 }
 0xa6b   :  { %v1543_v14 = vmul.f32 %v2114_v12, %v2465_v43  ;;  %v1570_v43 = vsub.s32 1, %v1565_v29 }
 0xa6d   :  { %v1545_v16 = vmul.f32 %v1543_v14, %v2553_v13 }
 0xa6e   :  { %v2116_v17 = vpop.eup %2115 }
 0xa6f   :  { %v1547_v19 = vadd.f32 %v1545_v16, %v2556_v15  ;;  %v1544_v23 = vmul.f32 %v2116_v17, %v2463_v42  ;;  %v43_v42 = vld [vmem:[#allocation2 + $0x3] ss:$8 sm:$0x3] }
 0xa70   :  { %v1567_v44 = vrot.slane %v43_v42, %v1566_v41  ;;  %v1571_v45 = vrot.slane %v43_v42, %v1570_v43 }
 0xa71   :  { %v2562_v20 = vadd.f32 %v1547_v19, %v2229_v3  ;;  %v1546_v21 = vmul.f32 %v1544_v23, %v2553_v13  ;;  %v1681_v3 = vld [vmem:[%s2643_s3 + $0x20] sm:$0xff] }
 0xa72   :  { %1731 = vmatpush1.msra.mxu0 %v1681_v3 }
 0xa73   :  { %1870 = vmatmul.mubr.msk.f32.vlgmr.msra.gmra.mxu1 %vm53_vm0, %v2562_v20  ;;  %v1548_v22 = vadd.f32 %v1546_v21, %v2556_v15  ;;  %1732 = vmatprep.subr.mxu0 %v2174_v18 }
 0xa74   :  { %1650 = vmatprep.mubr.f32.mxu1 %v2174_v18  ;;  %1733 = vmatpush1.msra.mxu0 %v1680_v25 }
 0xa75   :  { %v2570_v24 = vadd.f32 %v1548_v22, %v2245_v7  ;;  %1734 = vmatprep.subr.mxu0 %v2174_v18  ;;  %v1679_v7 = vld [vmem:[%s2643_s3 + $0x10] sm:$0xff]  ;;  %s2181_s3 = smov [#allocation5]  }
 0xa76   :  { %1735 = vmatpush1.msra.mxu0 %v1679_v7  ;;  %s1822_s8 = sshll.u32 %s2181_s3, 4  ;;  %s1823_s8 = int_to_ptr.vmem [resolvable:$true] %s1822_s8 }
 0xa77   :  { %1871 = vmatmul.mubr.msk.f32.gmra.mxu1 %vm53_vm0, %v2570_v24  ;;  %1736 = vmatprep.subr.mxu0 %v2174_v18  ;;  %s2149_s9 = scalar_lea.vmem %s1823_s8, 256  ;;  %p2154_p6 = scmp.lt.s32.totalorder %s1823_s8, %s1823_s8 }
 0xa78   :  { %1737 = vmatpush1.msra.mxu0 %v1678_v26  ;;  %p2150_p5 = scmp.ne.s32.totalorder %s1823_s8, %s2149_s9  ;;  %p2155_p7 = scmp.lt.s32.totalorder %s2149_s9, %s2149_s9 }
 0xa79   :  { %1738 = vmatprep.subr.mxu0 %v2174_v18 }
 0xa7a   :  { %1739 = vmatpush1.msra.mxu0 %v1677_v30  ;;  %p2156_p8 = por %p2155_p7, %p2154_p6 }
 0xa7b   :  { %1756 = vmatprep.subr.mxu0 %v2174_v18 }
 0xa7c   :  { %1757 = vmatpush2.msra.mxu0 %v1700_v32  ;;  %p2157_p9 = pnand %p2156_p8, %p2150_p5 }
 0xa7d   :  { %1758 = vmatprep.subr.mxu0 %v2174_v18 }
 0xa7e   :  { %1759 = vmatpush2.msra.mxu0 %v1699_v33 }
 0xa7f   :  { %1760 = vmatprep.subr.mxu0 %v2174_v18 }
 0xa80   :  { %1761 = vmatpush2.msra.mxu0 %v1698_v34 }
 0xa81   :  { %1762 = vmatprep.subr.mxu0 %v2174_v18 }
 0xa82   :  { %1763 = vmatpush2.msra.mxu0 %v1697_v35 }
 0xa83   :  { %1764 = vmatprep.subr.mxu0 %v2174_v18 }
 0xa84   :  { %1765 = vmatpush2.msra.mxu0 %v1696_v36 }
 0xa85   :  { %1766 = vmatprep.subr.mxu0 %v2174_v18 }
 0xa86   :  { %1767 = vmatpush2.msra.mxu0 %v1695_v37 }
 0xa87   :  { %1768 = vmatprep.subr.mxu0 %v2174_v18 }
 0xa88   :  { %1769 = vmatpush2.msra.mxu0 %v1694_v38 }
 0xa89   :  { %1770 = vmatprep.subr.mxu0 %v2174_v18 }
 0xa8a   :  { %1771 = vmatpush2.msra.mxu0 %v1693_v39 }
 0xb33   :  { %v1646_v46 = vpop.f32.mrf.mxu1 }
 0xb34   :  { %v1647_v47 = vadd.f32 %v1646_v46, %v1567_v44 }
 0xb35   :  { %v1648_v48 = vpop.f32.mrf.mxu1 }
 0xb36   :  { %v1661_v49 = vmul.f32 0.70710677, %v1647_v47  ;;  %v1649_v50 = vadd.f32 %v1648_v48, %v1571_v45  ;;  %v1657_v63 = vmul.f32 0.5, %v1647_v47 }
 0xb37   :  { %v1652_v51 = vpop.f32.mrf.mxu1 }
 0xb38   :  { %2117 = verf.f32 %v1661_v49  ;;  %v1662_v18 = vmul.f32 0.70710677, %v1649_v50  ;;  %v1653_v52 = vadd.f32 %v1652_v51, %v1567_v44  ;;  %v1658_v60 = vmul.f32 0.5, %v1649_v50 }
 0xb39   :  { %v1654_v53 = vpop.f32.mrf.mxu1 }
 0xb3a   :  { %2119 = verf.f32 %v1662_v18  ;;  %v1663_v54 = vmul.f32 0.70710677, %v1653_v52  ;;  %v1655_v55 = vadd.f32 %v1654_v53, %v1571_v45  ;;  %v1659_v4 = vmul.f32 0.5, %v1653_v52 }
 0xb3c   :  { %2121 = verf.f32 %v1663_v54  ;;  %v1664_v56 = vmul.f32 0.70710677, %v1655_v55  ;;  %v1660_v2 = vmul.f32 0.5, %v1655_v55 }
 0xb3e   :  { %2123 = verf.f32 %v1664_v56 }
 0xb45   :  { %v2118_v57 = vpop.eup %2117 }
 0xb46   :  { %v1669_v59 = vadd.f32 1.0, %v2118_v57 }
 0xb47   :  { %v2120_v58 = vpop.eup %2119 }
 0xb48   :  { %v1670_v61 = vadd.f32 1.0, %v2120_v58  ;;  %v1673_v1 = vmul.f32 %v1669_v59, %v1657_v63 }
 0xb49   :  { %v2122_v62 = vpop.eup %2121 }
 0xb4a   :  { %v1674_v0 = vmul.f32 %v1670_v61, %v1658_v60  ;;  %v1671_v27 = vadd.f32 1.0, %v2122_v62 }
 0xb4b   :  { %v2124_v28 = vpop.eup %2123 }
 0xb4c   :  { %v1672_v31 = vadd.f32 1.0, %v2124_v28  ;;  %1872 = vmatprep.mubr.msk.f32.mxu0 %vm1701_vm3, %v1674_v0  ;;  %v1675_v6 = vmul.f32 %v1671_v27, %v1659_v4 }
 0xb4d   :  { %1773 = vmatmul.mubr.f32.vlgmr.msra.gmra.mxu0 %v1673_v1 }
 0xb4e   :  { %v1676_v5 = vmul.f32 %v1672_v31, %v1660_v2 }
 0xb50   :  { %1873 = vmatprep.mubr.msk.f32.mxu0 %vm1701_vm3, %v1676_v5 }
 0xb51   :  { %1778 = vmatmul.mubr.f32.gmra.mxu0 %v1675_v6 }
 0xc0d   :  { %v1774_v9 = vpop.f32.mrf.mxu0 }
 0xc0e   :  { %v1775_v10 = vadd.f32 %v1774_v9, %v44_v8 }
 0xc0f   :  { %v1776_v11 = vpop.f32.mrf.mxu0 }
 0xc10   :  { %v1783_v12 = vsel %vm53_vm0, %v1775_v10, 0.0 }
 0xc11   :  { %1784 = vadd.xlane.f32.xlu0 %v1783_v12  ;;  %v1779_v14 = vpop.f32.mrf.mxu0 }
 0xc12   :  { %v1780_v16 = vadd.f32 %v1779_v14, %v44_v8 }
 0xc13   :  { %v1781_v17 = vpop.f32.mrf.mxu0 }
 0xc14   :  { %v1786_v19 = vsel %vm53_vm0, %v1780_v16, 0.0 }
 0xc15   :  { %1787 = vadd.xlane.f32.xlu1 %v1786_v19 }
 0xc9a   :  { %v1785_v23 = vpop.xlane.xlu0 %1784 }
 0xc9b   :  { %v1789_v21 = vmul.f32 0.020833334, %v1785_v23 }
 0xc9d   :  { %v1791_v22 = vsub.f32 %v1775_v10, %v1789_v21 }
 0xc9e   :  { %v1788_v3 = vpop.xlane.xlu1 %1787 }
 0xc9f   :  { %v1790_v25 = vmul.f32 0.020833334, %v1788_v3  ;;  %v1793_v7 = vmul.f32 %v1791_v22, %v1791_v22 }
 0xca1   :  { %v1792_v26 = vsub.f32 %v1780_v16, %v1790_v25  ;;  %v1795_v30 = vsel %vm53_vm0, %v1793_v7, 0.0 }
 0xca2   :  { %1796 = vadd.xlane.f32.xlu0 %v1795_v30 }
 0xca3   :  { %v1794_v32 = vmul.f32 %v1792_v26, %v1792_v26 }
 0xca5   :  { %v1798_v33 = vsel %vm53_vm0, %v1794_v32, 0.0 }
 0xca6   :  { %1799 = vadd.xlane.f32.xlu1 %v1798_v33 }
 0xd2b   :  { %v1797_v34 = vpop.xlane.xlu0 %1796 }
 0xd2c   :  { %v1801_v35 = vmul.f32 0.020833334, %v1797_v34 }
 0xd2e   :  { %v1803_v36 = vadd.f32 1e-05, %v1801_v35 }
 0xd2f   :  { %v1800_v37 = vpop.xlane.xlu1 %1799 }
 0xd30   :  { %2125 = vrsqrt.f32 %v1803_v36  ;;  %v1802_v38 = vmul.f32 0.020833334, %v1800_v37 }
 0xd32   :  { %v1804_v39 = vadd.f32 1e-05, %v1802_v38 }
 0xd34   :  { %2127 = vrsqrt.f32 %v1804_v39 }
 0xd3d   :  { %v2126_v40 = vpop.eup %2125 }
 0xd3e   :  { %v1807_v29 = vmul.f32 %v2126_v40, %v1791_v22 }
 0xd40   :  { %v1809_v41 = vmul.f32 %v1807_v29, %v2553_v13 }
 0xd41   :  { %v2128_v42 = vpop.eup %2127 }
 0xd42   :  { %v1808_v43 = vmul.f32 %v2128_v42, %v1792_v26  ;;  %v1811_v44 = vadd.f32 %v1809_v41, %v2556_v15 }
 0xd44   :  { %v1810_v45 = vmul.f32 %v1808_v43, %v2553_v13  ;;  %v1813_v46 = vadd.f32 %v1811_v44, %v2562_v20 }
 0xd46   :  { %v1812_v47 = vadd.f32 %v1810_v45, %v2556_v15  ;;  %1815 = vst.msk [vmem:[#allocation5] sm:$0xff] %vm53_vm0, %v1813_v46 }
 0xd48   :  { %v1814_v48 = vadd.f32 %v1812_v47, %v2570_v24 }
 0xd4a   :  { %1816 = vst.msk [vmem:[#allocation5 + $0x8] sm:$0xff] %vm53_vm0, %v1814_v48 }
 0xd4b   :  { %2160 = shalt.err (!%p2157_p9)
}
 0xd4c   :  { %s2182_s10 = smov 128   ;;  %s2183_s11 = smov 8  }
 0xd4d   :  { %1828 = dma.vmem_to_hbm [thread:$0]  %s1823_s8, 256, %s2645_s5, [#allocation4], %s2182_s10, %s2182_s10, %s2183_s11  }
 0xd4e   :  { %2171 = dma.done.wait [#allocation4], 256  }
 0xd4f   :  { %2172 = vsyncadd [#allocation4], 4294967040 }
 0xd50   :  { %1832 = vsyncpa [#allocation3], 1 }
 0xd51   :  { %1833 = vsyncpa [#allocation4], 1 }

</bundles_post_ra>
